<compile_context>
chip_gen: v7x
topology: tpu7x:2x2x1
jax: 0.10.0
libtpu: 0.0.40
codegen_flags: <defaults>
</compile_context>

<pallas_src>
import functools

import jax
import jax.numpy as jnp
from jax import lax
from jax.experimental import pallas as pl
from jax.experimental.pallas import tpu as pltpu


def _conv_v_kernel(inv_count, p_ref, ws_ref, g_ref, b_ref, out_ref,
                   ext_ref, cs_ref, gram_ref):
    step = pl.program_id(0)
    th, m_pad, k = p_ref.shape
    cpad = ws_ref.shape[1]

    # Conv2d for this TH-row block: one MXU matmul (TH*M, K) @ (K, Cout_pad).
    # gamma's per-channel sign is pre-folded into ws, so y is already oriented
    # for the H-max (negative-gamma channels effectively track the min).
    p2 = p_ref[...].reshape(th * m_pad, k)
    y = jnp.dot(p2, ws_ref[...], preferred_element_type=jnp.float32)

    # MaxPool over H: reduce the TH local rows first, then merge once into the
    # running extreme (single scratch slab, single RMW per grid step).
    blk_max = jnp.max(y.reshape(th, m_pad, cpad), axis=0)

    # BN statistics on the MXU: accumulate patch column sums and the patch Gram
    # matrix; s1/s2 are recovered from them at finalize.  Zero-padded rows
    # contribute exactly nothing, so no masking is needed.
    cs = jnp.sum(p2, axis=0, keepdims=True)                        # (1, K)
    gram = lax.dot_general(p2, p2, (((0,), (0,)), ((), ())),
                           preferred_element_type=jnp.float32)     # (K, K)

    @pl.when(step == 0)
    def _first():
        ext_ref[...] = blk_max
        cs_ref[...] = cs
        gram_ref[...] = gram

    @pl.when(step != 0)
    def _rest():
        ext_ref[...] = jnp.maximum(ext_ref[...], blk_max)
        cs_ref[...] = cs_ref[...] + cs
        gram_ref[...] = gram_ref[...] + gram

    @pl.when(step == pl.num_programs(0) - 1)
    def _finalize():
        w = ws_ref[...]
        # mean_s = sgn * mean; signs cancel in mean^2 and in s2 (sgn^2 == 1).
        mean_s = jnp.dot(cs_ref[...], w,
                         preferred_element_type=jnp.float32) * inv_count
        gw = jnp.dot(gram_ref[...], w, preferred_element_type=jnp.float32)
        s2 = jnp.sum(w * gw, axis=0, keepdims=True)
        var = jnp.maximum(s2 * inv_count - mean_s * mean_s, 0.0)
        ascale = jnp.abs(g_ref[...]) * lax.rsqrt(var + 1e-5)   # |folded scale|
        shift = b_ref[...] - mean_s * ascale                   # == beta - mean*scale
        # relu is monotone; ext = max_h(sgn*y) so |scale|*ext + shift is the
        # exact post-BN maximum over H for every channel sign.
        out_ref[...] = jnp.maximum(ext_ref[...] * ascale + shift, 0.0)


def conv_v_forward(x, weight, bias, gamma, beta, filter_shape):
    """x: (N, Cin, H, W) float32 (PyTorch NCHW). Returns (N, Cout, W)."""
    del bias  # train-mode BatchNorm subtracts the batch mean -> bias cancels.
    n, cin, h, w = x.shape
    fh, fw = filter_shape
    cout = weight.shape[0]
    pad = fw // 2
    hout = h - fh + 1
    wout = w + 2 * pad - fw + 1
    k = cin * fh * fw
    m = n * wout
    m_pad = max(8, -(-m // 8) * 8)                # sublane-aligned row slab
    cout_pad = max(128, -(-cout // 128) * 128)    # lane-dense channel axis

    # --- glue: im2col emitted directly in (Hout, N*Wout, K) order -----------
    # TODO(synk): form these taps inside the kernel from the raw padded input
    # (manual fh-row window DMA) to cut the streamed HBM bytes by ~fh*fw.
    xp = jnp.pad(x.astype(jnp.float32), ((0, 0), (0, 0), (0, 0), (pad, pad)))
    xp = jnp.transpose(xp, (2, 0, 3, 1))          # (H, N, W+2p, Cin)
    cols = []
    for c in range(cin):
        for dh in range(fh):
            for dw in range(fw):
                cols.append(xp[dh:dh + hout, :, dw:dw + wout, c])  # (Hout,N,Wout)
    patches = jnp.stack(cols, axis=-1).reshape(hout, m, k)
    if m_pad != m:
        patches = jnp.pad(patches, ((0, 0), (0, m_pad - m), (0, 0)))

    gamma = gamma.astype(jnp.float32)
    beta = beta.astype(jnp.float32)
    sgn = jnp.where(gamma >= 0.0, 1.0, -1.0)
    # Fold sign(gamma) into the weight columns: no per-step y*sgn pass needed.
    wmat = weight.reshape(cout, k).T.astype(jnp.float32) * sgn[None, :]
    wmat = jnp.pad(wmat, ((0, 0), (0, cout_pad - cout)))            # (K, Cpad)
    g2 = jnp.pad(gamma, (0, cout_pad - cout)).reshape(1, cout_pad)
    b2 = jnp.pad(beta, (0, cout_pad - cout)).reshape(1, cout_pad)

    # --- VMEM budget / TH row-block selection --------------------------------
    try:
        phys_vmem = int(pltpu.get_tpu_info().vmem_capacity_bytes)
    except Exception:
        phys_vmem = 64 * 1024 * 1024              # v7x-safe fallback
    vmem_limit = min(phys_vmem * 3 // 4, 112 * 1024 * 1024)

    fixed = 4 * (2 * m_pad * cout_pad + k * cout_pad + 2 * cout_pad + k * k)
    per_row = 4 * (2 * m_pad * k + 3 * m_pad * cout_pad)   # dbl-buf patches + temps
    budget = max(vmem_limit // 2 - fixed, per_row)
    cap = max(1, budget // per_row)
    th = 1
    for d in range(1, hout + 1):                  # largest divisor of hout <= cap
        if hout % d == 0 and d <= cap:
            th = d
    steps = hout // th

    patch_kwargs = {}
    if steps >= 4 and 3 * th * m_pad * k * 4 < budget:
        patch_kwargs["pipeline_mode"] = pl.Buffered(3)      # deeper patch stream

    cost = pl.CostEstimate(
        flops=2 * hout * m_pad * k * (cout_pad + k) + 2 * hout * m_pad * cout_pad,
        transcendentals=cout_pad,
        bytes_accessed=4 * (hout * m_pad * k + k * cout_pad
                            + 3 * cout_pad + m_pad * cout_pad))

    kernel = functools.partial(_conv_v_kernel, 1.0 / float(n * hout * wout))

    out = pl.pallas_call(
        kernel,
        out_shape=jax.ShapeDtypeStruct((m_pad, cout_pad), jnp.float32),
        grid=(steps,),
        in_specs=[
            pl.BlockSpec((th, m_pad, k), lambda i: (i, 0, 0), **patch_kwargs),
            pl.BlockSpec((k, cout_pad), lambda i: (0, 0)),   # resident signed W
            pl.BlockSpec((1, cout_pad), lambda i: (0, 0)),   # gamma
            pl.BlockSpec((1, cout_pad), lambda i: (0, 0)),   # beta
        ],
        out_specs=pl.BlockSpec((m_pad, cout_pad), lambda i: (0, 0)),
        scratch_shapes=[
            pltpu.VMEM((m_pad, cout_pad), jnp.float32),      # running signed max
            pltpu.VMEM((1, k), jnp.float32),                 # patch column sums
            pltpu.VMEM((k, k), jnp.float32),                 # patch Gram matrix
        ],
        compiler_params=pltpu.CompilerParams(
            dimension_semantics=("arbitrary",),              # BN/pool reduction
            vmem_limit_bytes=vmem_limit),
        cost_estimate=cost,
    )(patches, wmat, g2, b2)

    out = out[:m, :cout].reshape(n, wout, cout)
    return jnp.transpose(out, (0, 2, 1))                     # (N, Cout, W)


def _reference(x, weight, bias, gamma, beta, filter_shape):
    """Pure-JAX reference of the PyTorch forward (training-mode BN)."""
    fh, fw = filter_shape
    y = lax.conv_general_dilated(
        x, weight, window_strides=(1, 1),
        padding=((0, 0), (fw // 2, fw // 2)),
        dimension_numbers=('NCHW', 'OIHW', 'NCHW'),
        precision=lax.Precision.HIGHEST)
    y = y + bias[None, :, None, None]
    mean = jnp.mean(y, axis=(0, 2, 3), keepdims=True)
    var = jnp.mean((y - mean) ** 2, axis=(0, 2, 3), keepdims=True)
    y = (y - mean) * lax.rsqrt(var + 1e-5)
    y = y * gamma[None, :, None, None] + beta[None, :, None, None]
    y = jnp.maximum(y, 0.0)
    return jnp.max(y, axis=2)   # MaxPool over full H + squeeze(2)


if __name__ == "__main__":
    key = jax.random.PRNGKey(0)
    kx, kw, kb, kg, kbe = jax.random.split(key, 5)

    N, Cin, H, W = 2, 4, 16, 16
    Cout = 8
    filter_shape = (3, 3)

    x = jax.random.normal(kx, (N, Cin, H, W), dtype=jnp.float32)

    # Deterministic parameter init (shapes per nn.Conv2d / nn.BatchNorm2d).
    fan_in = Cin * filter_shape[0] * filter_shape[1]
    bound = 1.0 / (fan_in ** 0.5)
    weight = jax.random.uniform(kw, (Cout, Cin) + filter_shape,
                                minval=-bound, maxval=bound, dtype=jnp.float32)
    bias = jax.random.uniform(kb, (Cout,), minval=-bound, maxval=bound,
                              dtype=jnp.float32)
    # Include negative gamma channels to exercise the signed-max finalize path.
    signs = jnp.array([1., -1., 1., 1., -1., 1., 1., -1.], dtype=jnp.float32)
    gamma = (1.0 + 0.1 * jax.random.normal(kg, (Cout,), dtype=jnp.float32)) * signs
    beta = 0.1 * jax.random.normal(kbe, (Cout,), dtype=jnp.float32)

    out = jax.block_until_ready(
        conv_v_forward(x, weight, bias, gamma, beta, filter_shape))

    ref = _reference(x, weight, bias, gamma, beta, filter_shape)
    assert out.shape == (N, Cout, W), out.shape
    err = float(jnp.max(jnp.abs(out - ref)))
    assert err < 1e-4, err

    print("KERNEL_OK")
</pallas_src>

<mosaic_0001>
module attributes {stable_mosaic.version = 11 : i64} {
  func.func @_conv_v_kernel(%arg0: i32, %arg1: memref<14x32x36xf32, #tpu.memory_space<vmem>>, %arg2: memref<36x128xf32, #tpu.memory_space<vmem>>, %arg3: memref<1x128xf32, #tpu.memory_space<vmem>>, %arg4: memref<1x128xf32, #tpu.memory_space<vmem>>, %arg5: memref<32x128xf32, #tpu.memory_space<vmem>>, %arg6: memref<32x128xf32, #tpu.memory_space<vmem>>, %arg7: memref<1x36xf32, #tpu.memory_space<vmem>>, %arg8: memref<36x36xf32, #tpu.memory_space<vmem>>) attributes {dimension_semantics = [#tpu.dimension_semantics<arbitrary>], iteration_bounds = array<i64: 1>, scalar_prefetch = 0 : i64, scratch_operands = 3 : i64, tpu.core_type = #tpu.core_type<tc>, window_params = [{transform_indices = @transform_0, window_bounds = array<i64: 14, 32, 36>}, {pipeline_mode = #tpu.pipeline_mode<synchronous>, transform_indices = @transform_1, window_bounds = array<i64: 36, 128>}, {pipeline_mode = #tpu.pipeline_mode<synchronous>, transform_indices = @transform_2, window_bounds = array<i64: 1, 128>}, {pipeline_mode = #tpu.pipeline_mode<synchronous>, transform_indices = @transform_3, window_bounds = array<i64: 1, 128>}, {pipeline_mode = #tpu.pipeline_mode<synchronous>, transform_indices = @transform_4, window_bounds = array<i64: 32, 128>}]} {
    %c0 = arith.constant 0 : index
    %c0_0 = arith.constant 0 : index
    %c0_1 = arith.constant 0 : index
    %0 = vector.load %arg1[%c0, %c0_0, %c0_1] : memref<14x32x36xf32, #tpu.memory_space<vmem>>, vector<14x32x36xf32>
    %1 = vector.shape_cast %0 : vector<14x32x36xf32> to vector<448x36xf32>
    %c0_2 = arith.constant 0 : index
    %c0_3 = arith.constant 0 : index
    %2 = vector.load %arg2[%c0_2, %c0_3] : memref<36x128xf32, #tpu.memory_space<vmem>>, vector<36x128xf32>
    %cst = arith.constant dense<0.000000e+00> : vector<448x128xf32>
    %3 = tpu.matmul %1, %2, %cst {dimension_numbers = #tpu.dot_dimension_numbers<[1], [0], [0], [1], [0, 0, 1, 1], [], []>} : vector<448x36xf32>, vector<36x128xf32>, vector<448x128xf32> -> vector<448x128xf32>
    %4 = vector.shape_cast %3 : vector<448x128xf32> to vector<14x32x128xf32>
    %cst_4 = arith.constant dense<0xFF800000> : vector<32x128xf32>
    %5 = vector.multi_reduction <maximumf>, %4, %cst_4 [0] : vector<14x32x128xf32> to vector<32x128xf32>
    %cst_5 = arith.constant dense<0.000000e+00> : vector<36xf32>
    %6 = vector.multi_reduction <add>, %1, %cst_5 [0] : vector<448x36xf32> to vector<36xf32>
    %7 = vector.shape_cast %6 : vector<36xf32> to vector<1x36xf32>
    %cst_6 = arith.constant dense<0.000000e+00> : vector<36x36xf32>
    %8 = tpu.matmul %1, %1, %cst_6 {dimension_numbers = #tpu.dot_dimension_numbers<[0], [0], [1], [1], [0, 1, 1, 1], [], []>} : vector<448x36xf32>, vector<448x36xf32>, vector<36x36xf32> -> vector<36x36xf32>
    %c0_i32 = arith.constant 0 : i32
    %9 = arith.cmpi eq, %arg0, %c0_i32 : i32
    %10 = arith.extui %9 : i1 to i32
    %c0_i32_7 = arith.constant 0 : i32
    %11 = arith.cmpi ne, %10, %c0_i32_7 : i32
    scf.if %11 {
      %c0_12 = arith.constant 0 : index
      %c0_13 = arith.constant 0 : index
      %18 = vector.load %arg6[%c0_12, %c0_13] : memref<32x128xf32, #tpu.memory_space<vmem>>, vector<32x128xf32>
      tpu.vector_store %arg6[%c0_12, %c0_13], %5 {strides = array<i32>} : memref<32x128xf32, #tpu.memory_space<vmem>>, vector<32x128xf32>,
      %c0_14 = arith.constant 0 : index
      %c0_15 = arith.constant 0 : index
      %19 = vector.load %arg7[%c0_14, %c0_15] : memref<1x36xf32, #tpu.memory_space<vmem>>, vector<1x36xf32>
      tpu.vector_store %arg7[%c0_14, %c0_15], %7 {strides = array<i32>} : memref<1x36xf32, #tpu.memory_space<vmem>>, vector<1x36xf32>,
      %c0_16 = arith.constant 0 : index
      %c0_17 = arith.constant 0 : index
      %20 = vector.load %arg8[%c0_16, %c0_17] : memref<36x36xf32, #tpu.memory_space<vmem>>, vector<36x36xf32>
      tpu.vector_store %arg8[%c0_16, %c0_17], %8 {strides = array<i32>} : memref<36x36xf32, #tpu.memory_space<vmem>>, vector<36x36xf32>,
    } else {
    }
    %c0_i32_8 = arith.constant 0 : i32
    %12 = arith.cmpi ne, %arg0, %c0_i32_8 : i32
    %13 = arith.extui %12 : i1 to i32
    %c0_i32_9 = arith.constant 0 : i32
    %14 = arith.cmpi ne, %13, %c0_i32_9 : i32
    scf.if %14 {
      %c0_12 = arith.constant 0 : index
      %c0_13 = arith.constant 0 : index
      %18 = vector.load %arg6[%c0_12, %c0_13] : memref<32x128xf32, #tpu.memory_space<vmem>>, vector<32x128xf32>
      %19 = arith.maximumf %18, %5 : vector<32x128xf32>
      %c0_14 = arith.constant 0 : index
      %c0_15 = arith.constant 0 : index
      %20 = vector.load %arg6[%c0_14, %c0_15] : memref<32x128xf32, #tpu.memory_space<vmem>>, vector<32x128xf32>
      tpu.vector_store %arg6[%c0_14, %c0_15], %19 {strides = array<i32>} : memref<32x128xf32, #tpu.memory_space<vmem>>, vector<32x128xf32>,
      %c0_16 = arith.constant 0 : index
      %c0_17 = arith.constant 0 : index
      %21 = vector.load %arg7[%c0_16, %c0_17] : memref<1x36xf32, #tpu.memory_space<vmem>>, vector<1x36xf32>
      %22 = arith.addf %21, %7 : vector<1x36xf32>
      %c0_18 = arith.constant 0 : index
      %c0_19 = arith.constant 0 : index
      %23 = vector.load %arg7[%c0_18, %c0_19] : memref<1x36xf32, #tpu.memory_space<vmem>>, vector<1x36xf32>
      tpu.vector_store %arg7[%c0_18, %c0_19], %22 {strides = array<i32>} : memref<1x36xf32, #tpu.memory_space<vmem>>, vector<1x36xf32>,
      %c0_20 = arith.constant 0 : index
      %c0_21 = arith.constant 0 : index
      %24 = vector.load %arg8[%c0_20, %c0_21] : memref<36x36xf32, #tpu.memory_space<vmem>>, vector<36x36xf32>
      %25 = arith.addf %24, %8 : vector<36x36xf32>
      %c0_22 = arith.constant 0 : index
      %c0_23 = arith.constant 0 : index
      %26 = vector.load %arg8[%c0_22, %c0_23] : memref<36x36xf32, #tpu.memory_space<vmem>>, vector<36x36xf32>
      tpu.vector_store %arg8[%c0_22, %c0_23], %25 {strides = array<i32>} : memref<36x36xf32, #tpu.memory_space<vmem>>, vector<36x36xf32>,
    } else {
    }
    %c0_i32_10 = arith.constant 0 : i32
    %15 = arith.cmpi eq, %arg0, %c0_i32_10 : i32
    %16 = arith.extui %15 : i1 to i32
    %c0_i32_11 = arith.constant 0 : i32
    %17 = arith.cmpi ne, %16, %c0_i32_11 : i32
    scf.if %17 {
      %c0_12 = arith.constant 0 : index
      %c0_13 = arith.constant 0 : index
      %18 = vector.load %arg2[%c0_12, %c0_13] : memref<36x128xf32, #tpu.memory_space<vmem>>, vector<36x128xf32>
      %c0_14 = arith.constant 0 : index
      %c0_15 = arith.constant 0 : index
      %19 = vector.load %arg7[%c0_14, %c0_15] : memref<1x36xf32, #tpu.memory_space<vmem>>, vector<1x36xf32>
      %cst_16 = arith.constant dense<0.000000e+00> : vector<1x128xf32>
      %20 = tpu.matmul %19, %18, %cst_16 {dimension_numbers = #tpu.dot_dimension_numbers<[1], [0], [0], [1], [0, 0, 1, 1], [], []>} : vector<1x36xf32>, vector<36x128xf32>, vector<1x128xf32> -> vector<1x128xf32>
      %cst_17 = arith.constant 0.00223214296 : f32
      %21 = vector.broadcast %cst_17 : f32 to vector<1x128xf32>
      %22 = arith.mulf %20, %21 : vector<1x128xf32>
      %c0_18 = arith.constant 0 : index
      %c0_19 = arith.constant 0 : index
      %23 = vector.load %arg8[%c0_18, %c0_19] : memref<36x36xf32, #tpu.memory_space<vmem>>, vector<36x36xf32>
      %cst_20 = arith.constant dense<0.000000e+00> : vector<36x128xf32>
      %24 = tpu.matmul %23, %18, %cst_20 {dimension_numbers = #tpu.dot_dimension_numbers<[1], [0], [0], [1], [0, 0, 1, 1], [], []>} : vector<36x36xf32>, vector<36x128xf32>, vector<36x128xf32> -> vector<36x128xf32>
      %25 = arith.mulf %18, %24 : vector<36x128xf32>
      %cst_21 = arith.constant dense<0.000000e+00> : vector<128xf32>
      %26 = vector.multi_reduction <add>, %25, %cst_21 [0] : vector<36x128xf32> to vector<128xf32>
      %27 = vector.shape_cast %26 : vector<128xf32> to vector<1x128xf32>
      %cst_22 = arith.constant 0.00223214296 : f32
      %28 = vector.broadcast %cst_22 : f32 to vector<1x128xf32>
      %29 = arith.mulf %27, %28 : vector<1x128xf32>
      %30 = arith.mulf %22, %22 : vector<1x128xf32>
      %31 = arith.subf %29, %30 : vector<1x128xf32>
      %cst_23 = arith.constant 0.000000e+00 : f32
      %32 = vector.broadcast %cst_23 : f32 to vector<1x128xf32>
      %33 = arith.maximumf %31, %32 : vector<1x128xf32>
      %c0_24 = arith.constant 0 : index
      %c0_25 = arith.constant 0 : index
      %34 = vector.load %arg3[%c0_24, %c0_25] : memref<1x128xf32, #tpu.memory_space<vmem>>, vector<1x128xf32>
      %35 = math.absf %34 : vector<1x128xf32>
      %cst_26 = arith.constant 9.99999974E-6 : f32
      %36 = vector.broadcast %cst_26 : f32 to vector<1x128xf32>
      %37 = arith.addf %33, %36 : vector<1x128xf32>
      %38 = math.rsqrt %37 : vector<1x128xf32>
      %39 = arith.mulf %35, %38 : vector<1x128xf32>
      %c0_27 = arith.constant 0 : index
      %c0_28 = arith.constant 0 : index
      %40 = vector.load %arg4[%c0_27, %c0_28] : memref<1x128xf32, #tpu.memory_space<vmem>>, vector<1x128xf32>
      %41 = arith.mulf %22, %39 : vector<1x128xf32>
      %42 = arith.subf %40, %41 : vector<1x128xf32>
      %c0_29 = arith.constant 0 : index
      %c0_30 = arith.constant 0 : index
      %43 = vector.load %arg6[%c0_29, %c0_30] : memref<32x128xf32, #tpu.memory_space<vmem>>, vector<32x128xf32>
      %44 = vector.broadcast %39 : vector<1x128xf32> to vector<32x128xf32>
      %45 = arith.mulf %43, %44 : vector<32x128xf32>
      %46 = vector.broadcast %42 : vector<1x128xf32> to vector<32x128xf32>
      %47 = arith.addf %45, %46 : vector<32x128xf32>
      %cst_31 = arith.constant 0.000000e+00 : f32
      %48 = vector.broadcast %cst_31 : f32 to vector<32x128xf32>
      %49 = arith.maximumf %47, %48 : vector<32x128xf32>
      %c0_32 = arith.constant 0 : index
      %c0_33 = arith.constant 0 : index
      %50 = vector.load %arg5[%c0_32, %c0_33] : memref<32x128xf32, #tpu.memory_space<vmem>>, vector<32x128xf32>
      tpu.vector_store %arg5[%c0_32, %c0_33], %49 {strides = array<i32>} : memref<32x128xf32, #tpu.memory_space<vmem>>, vector<32x128xf32>,
    } else {
    }
    return
  }
  func.func @transform_0(%arg0: i32) -> (i32, i32, i32) {
    %c0_i32 = arith.constant 0 : i32
    %c0_i32_0 = arith.constant 0 : i32
    %c0_i32_1 = arith.constant 0 : i32
    return %arg0, %c0_i32, %c0_i32_0 : i32, i32, i32
  }
  func.func @transform_1(%arg0: i32) -> (i32, i32) {
    %c0_i32 = arith.constant 0 : i32
    %c0_i32_0 = arith.constant 0 : i32
    %c0_i32_1 = arith.constant 0 : i32
    return %c0_i32, %c0_i32_0 : i32, i32
  }
  func.func @transform_2(%arg0: i32) -> (i32, i32) {
    %c0_i32 = arith.constant 0 : i32
    %c0_i32_0 = arith.constant 0 : i32
    %c0_i32_1 = arith.constant 0 : i32
    return %c0_i32, %c0_i32_0 : i32, i32
  }
  func.func @transform_3(%arg0: i32) -> (i32, i32) {
    %c0_i32 = arith.constant 0 : i32
    %c0_i32_0 = arith.constant 0 : i32
    %c0_i32_1 = arith.constant 0 : i32
    return %c0_i32, %c0_i32_0 : i32, i32
  }
  func.func @transform_4(%arg0: i32) -> (i32, i32) {
    %c0_i32 = arith.constant 0 : i32
    %c0_i32_0 = arith.constant 0 : i32
    %c0_i32_1 = arith.constant 0 : i32
    return %c0_i32, %c0_i32_0 : i32, i32
  }
}

</mosaic_0001>

<bundles_post_ra>
// kernel: tpu_custom_call.1
= control target key start
LH: loop header
LB: loop body
LE: loop exit
PB: predicated region body
PF: predicated region fallthrough
CT: control target
= control target key end

     0   :  { %9 = vsyncpa [#allocation6], 0  ;;  %s2714_s0 = inlined_call_operand.hbm [shape: f32[14,32,36], index: 0, kind: input, shape index: {}]   ;;  %s2715_s1 = inlined_call_operand.hbm [shape: f32[36,128], index: 1, kind: input, shape index: {}]   ;;  %s2716_s2 = inlined_call_operand.vmem [shape: f32[1,128], index: 2, kind: input, shape index: {}]   ;;  %s2717_s3 = inlined_call_operand.vmem [shape: f32[1,128], index: 3, kind: input, shape index: {}]   ;;  %s2718_s4 = inlined_call_operand.hbm [shape: f32[32,128], index: 4, kind: output, shape index: {}]  }
   0x1   :  { %10 = vsyncpa [#allocation9], 0 }
   0x2   :  { %11 = vsyncpa [#allocation7], 0  ;;  %s2021_s15 = smov [#allocation5]   ;;  %s1949_s19 = scalar_lea.hbm %s2714_s0, 7168 }
   0x3   :  { %s17_s16 = sshll.u32 %s2021_s15, 4  ;;  %p1950_p0 = scmp.ne.s32.totalorder %s2714_s0, %s1949_s19  ;;  %s18_s16 = int_to_ptr.vmem [resolvable:$true] %s17_s16 }
   0x4   :  { %p1953_p1 = scmp.lt.u32.totalorder %s1949_s19, %s2714_s0 }
   0x6   :  { %p1955_p2 = pnand %p1953_p1, %p1950_p0 }
   0x8   :  { %1958 = shalt.err (!%p1955_p2)
}
   0x9   :  { %s1959_s24 = scalar_lea.vmem %s18_s16, 7168  ;;  %p1964_p4 = scmp.lt.s32.totalorder %s18_s16, %s18_s16 }
   0xa   :  { %p1960_p3 = scmp.ne.s32.totalorder %s18_s16, %s1959_s24  ;;  %p1965_p5 = scmp.lt.s32.totalorder %s1959_s24, %s1959_s24 }
   0xc   :  { %p1966_p6 = por %p1965_p5, %p1964_p4 }
   0xe   :  { %p1967_p7 = pnand %p1966_p6, %p1960_p3 }
  0x10   :  { %1970 = shalt.err (!%p1967_p7)
}
  0x11   :  { %s2022_s25 = smov 128   ;;  %s2023_s26 = smov 8  }
  0x12   :  { %23 = dma.hbm_to_vmem [thread:$0]  %s2714_s0, 7168, %s18_s16, [#allocation6], %s2022_s25, %s2022_s25, %s2023_s26  }
  0x13   :  { %s2024_s29 = smov [#allocation8]   ;;  %s1971_s7 = scalar_lea.hbm %s2715_s1, 640 }
  0x14   :  { %s29_s30 = sshll.u32 %s2024_s29, 4  ;;  %p1972_p8 = scmp.ne.s32.totalorder %s2715_s1, %s1971_s7  ;;  %s30_s30 = int_to_ptr.vmem [resolvable:$true] %s29_s30 }
  0x15   :  { %p1975_p9 = scmp.lt.u32.totalorder %s1971_s7, %s2715_s1 }
  0x17   :  { %p1977_p10 = pnand %p1975_p9, %p1972_p8 }
  0x19   :  { %1980 = shalt.err (!%p1977_p10)
}
  0x1a   :  { %s1981_s12 = scalar_lea.vmem %s30_s30, 640  ;;  %p1986_p12 = scmp.lt.s32.totalorder %s30_s30, %s30_s30 }
  0x1b   :  { %p1982_p11 = scmp.ne.s32.totalorder %s30_s30, %s1981_s12  ;;  %p1987_p13 = scmp.lt.s32.totalorder %s1981_s12, %s1981_s12 }
  0x1d   :  { %p1988_p0 = por %p1987_p13, %p1986_p12 }
  0x1f   :  { %p1989_p1 = pnand %p1988_p0, %p1982_p11 }
  0x21   :  { %1992 = shalt.err (!%p1989_p1)
}
  0x22   :  { %35 = dma.hbm_to_vmem [thread:$0]  %s2715_s1, 640, %s30_s30, [#allocation9], %s2022_s25, %s2022_s25, %s2023_s26  }
  0x23   :  { %2015 = dma.done.wait [#allocation6], 7168  }
  0x24   :  { %2016 = vsyncadd [#allocation6], 4294960128 }
  0x25   :  { %2017 = dma.done.wait [#allocation9], 640  }
  0x26   :  { %2018 = vsyncadd [#allocation9], 4294966656  ;;  %vm107_vm0 = vcmask 293888   ;;  %v2084_v0 = vld [vmem:[#allocation5 + $0x180] sm:$0xff]  ;;  %v103_v2 = vld [vmem:[#allocation8 + $0x8] sm:$0xff]  ;;  %vm276_vm1 = vcmask 1043456  }
  0x27   :  { %v102_v1 = vld [vmem:[#allocation8] sm:$0xff]  ;;  %890 = vxpose.xlu1.b32.start [1/8] (short) (narrow) %v2084_v0, 40  ;;  %v2091_v6 = vld [vmem:[#allocation5 + $0x188] sm:$0xff]  ;;  %v104_v9 = vld [vmem:[#allocation8 + $0x10] sm:$0xff]  ;;  %v2025_v48 = vmov 0.0|0.0   ;;  %vm1126_vm2 = vcmask 286720  }
  0x28   :  { %v1770_v3 = vpack.c.bf16 %v103_v2, %v102_v1  ;;  %v2087_v4 = vld [vmem:[#allocation5] sm:$0xff]  ;;  %v105_v10 = vld [vmem:[#allocation8 + $0x18] sm:$0xff]  ;;  %v47_v11 = vld [vmem:[#allocation5 + $0x8] sm:$0xff]  ;;  %vm922_vm3 = vcmask 523264   ;;  %vm2027_vm4 = vmmov 0   ;;  %vm1132_vm5 = vcmask 289792  }
  0x29   :  { %v2089_v5 = vld [vmem:[#allocation5 + $0x80] sm:$0xff]  ;;  %v677_v8 = vsel %vm107_vm0, %v2087_v4, 0.0  ;;  %1648 = vmatprep.mubr.msk.f32.mxu0 %vm107_vm0, %v2087_v4  ;;  %v1774_v12 = vpack.c.bf16 %v105_v10, %v104_v9  ;;  %v2099_v13 = vld [vmem:[#allocation5 + $0x88] sm:$0xff]  ;;  %v678_v14 = vsel %vm107_vm0, %v47_v11, 0.0  ;;  %v2103_v17 = vld [vmem:[#allocation5 + $0x10] sm:$0xff]  ;;  %v1780_v37 = vpack.c.bf16 %v47_v11, %v2087_v4 }
  0x2a   :  { %v1890_v7 = vpack.i.bf16 %v2087_v4, %v2089_v5  ;;  %1771 = vmatprep.subr.bf16.mxu0 %v1770_v3  ;;  %v1892_v15 = vpack.i.bf16 %v47_v11, %v2099_v13  ;;  %v679_v16 = vadd.f32 %v678_v14, %v677_v8  ;;  %v2106_v18 = vld [vmem:[#allocation5 + $0x90] sm:$0xff]  ;;  %v680_v19 = vsel %vm107_vm0, %v2103_v17, 0.0  ;;  %v2110_v20 = vld [vmem:[#allocation5 + $0x18] sm:$0xff]  ;;  %v106_v22 = vld [vmem:[#allocation8 + $0x20] sm:$0xf] }
  0x2b   :  { %1773 = vmatpush3.bf16.msra.mxu0 %v1770_v3  ;;  %891 = vxpose.xlu1.b32.cont [2/8] (short) (narrow) %v2091_v6, 40  ;;  %v2112_v21 = vld [vmem:[#allocation5 + $0x190] sm:$0xff]  ;;  %v682_v24 = vsel %vm107_vm0, %v2110_v20, 0.0  ;;  %v2116_v25 = vld [vmem:[#allocation5 + $0x20] sm:$0xff]  ;;  %v1894_v27 = vpack.i.bf16 %v2103_v17, %v2106_v18  ;;  %v2122_v29 = vld [vmem:[#allocation5 + $0x28] sm:$0xff]  ;;  %v1778_v32 = vpack.c.bf16 %v2099_v13, %v2089_v5 }
  0x2c   :  { %1891 = vxpose.xlu0.b32.start [1/16] (narrow) %v1890_v7, 40  ;;  %1775 = vmatprep.subr.bf16.mxu0 %v1774_v12  ;;  %v681_v23 = vadd.f32 %v680_v19, %v679_v16  ;;  %v684_v26 = vsel %vm107_vm0, %v2116_v25, 0.0  ;;  %v2126_v30 = vld [vmem:[#allocation5 + $0x98] sm:$0xff]  ;;  %v686_v31 = vsel %vm107_vm0, %v2122_v29, 0.0  ;;  %v2134_v35 = vld [vmem:[#allocation5 + $0x30] sm:$0xff]  ;;  %v2146_v41 = vld [vmem:[#allocation5 + $0xa0] sm:$0xff] }
  0x2d   :  { %v2132_v33 = vld [vmem:[#allocation5 + $0x198] sm:$0xff]  ;;  %v688_v36 = vsel %vm107_vm0, %v2134_v35, 0.0  ;;  %1779 = vmatprep.subr.bf16.mxu1 %v1778_v32  ;;  %v1896_v38 = vpack.i.bf16 %v2110_v20, %v2126_v30  ;;  %v2150_v43 = vld [vmem:[#allocation5 + $0x100] sm:$0xff]  ;;  %v2152_v44 = vld [vmem:[#allocation5 + $0x108] sm:$0xff]  ;;  %v1898_v51 = vpack.i.bf16 %v2116_v25, %v2146_v41 }
  0x2e   :  { %v683_v28 = vadd.f32 %v682_v24, %v681_v23  ;;  %v2142_v40 = vld [vmem:[#allocation5 + $0x38] sm:$0xff]  ;;  %v2156_v45 = vld [vmem:[#allocation5 + $0x1a0] sm:$0xff]  ;;  %v2163_v49 = vpack.c.bf16 %v2152_v44, %v2150_v43  ;;  %1781 = vmatpush3.bf16.msra.mxu1 %v1780_v37  ;;  %v2169_v53 = vld [vmem:[#allocation5 + $0x48] sm:$0xff]  ;;  %v1782_v24 = vpack.c.bf16 %v2126_v30, %v2106_v18 }
  0x2f   :  { %1777 = vmatpush3.bf16.msra.mxu0 %v1774_v12  ;;  %892 = vxpose.xlu1.b32.cont [3/8] (short) (narrow) %v2112_v21, 40  ;;  %v690_v42 = vsel %vm107_vm0, %v2142_v40, 0.0  ;;  %v2158_v47 = vld [vmem:[#allocation5 + $0x40] sm:$0xff]  ;;  %v2175_v54 = vld [vmem:[#allocation5 + $0xa8] sm:$0xff]  ;;  %v694_v55 = vsel %vm107_vm0, %v2169_v53, 0.0  ;;  %v2183_v58 = vld [vmem:[#allocation5 + $0x50] sm:$0xff] }
  0x30   :  { %1893 = vxpose.xlu0.b32.cont [2/16] (narrow) %v1892_v15, 40  ;;  %1646 = vmatprep.subr.msk.mxu0 %vm276_vm1, %v106_v22  ;;  %v685_v34 = vadd.f32 %v684_v26, %v683_v28  ;;  %v692_v50 = vsel %vm107_vm0, %v2158_v47, 0.0  ;;  %v2181_v56 = vld [vmem:[#allocation5 + $0x1a8] sm:$0xff]  ;;  %v696_v59 = vsel %vm107_vm0, %v2183_v58, 0.0  ;;  %v1900_v60 = vpack.i.bf16 %v2122_v29, %v2175_v54  ;;  %v2190_v62 = vld [vmem:[#allocation5 + $0x58] sm:$0xff]  ;;  %v2195_v63 = vld [vmem:[#allocation5 + $0xb0] sm:$0xff] }
  0x31   :  { %v698_v1 = vsel %vm107_vm0, %v2190_v62, 0.0  ;;  %v2199_v2 = vld [vmem:[#allocation5 + $0x110] sm:$0xff]  ;;  %v2201_v3 = vld [vmem:[#allocation5 + $0x118] sm:$0xff]  ;;  %v2207_v8 = vld [vmem:[#allocation5 + $0x60] sm:$0xff]  ;;  %v1902_v14 = vpack.i.bf16 %v2134_v35, %v2195_v63  ;;  %1783 = vmatprep.subr.bf16.mxu1 %v1782_v24 }
  0x32   :  { %v687_v39 = vadd.f32 %v686_v31, %v685_v34  ;;  %v2205_v4 = vld [vmem:[#allocation5 + $0x1b0] sm:$0xff]  ;;  %v2211_v9 = vpack.c.bf16 %v2201_v3, %v2199_v2  ;;  %v700_v10 = vsel %vm107_vm0, %v2207_v8, 0.0  ;;  %v2217_v12 = vld [vmem:[#allocation5 + $0x128] sm:$0xff]  ;;  %v2239_v26 = vld [vmem:[#allocation5 + $0x1b8] sm:$0xff] }
  0x33   :  { %1647 = vmatpush3.msk.msra.mxu0 %vm276_vm1, %v106_v22  ;;  %893 = vxpose.xlu1.b32.cont [4/8] (short) (narrow) %v2132_v33, 40  ;;  %v2221_v16 = vld [vmem:[#allocation5 + $0x68] sm:$0xff]  ;;  %v2231_v22 = vld [vmem:[#allocation5 + $0xb8] sm:$0xff]  ;;  %v2241_v28 = vld [vmem:[#allocation5 + $0x70] sm:$0xff] }
  0x34   :  { %1895 = vxpose.xlu0.b32.cont [3/16] (narrow) %v1894_v27, 40  ;;  %1649 = vmatmul.mubr.msk.f32.vlgmr.msra.gmra.mrb[0].mxu0 %vm107_vm0, %v47_v11  ;;  %v689_v46 = vadd.f32 %v688_v36, %v687_v39  ;;  %v2215_v11 = vld [vmem:[#allocation5 + $0x120] sm:$0xff]  ;;  %v702_v23 = vsel %vm107_vm0, %v2221_v16, 0.0  ;;  %v704_v31 = vsel %vm107_vm0, %v2241_v28, 0.0  ;;  %v2246_v32 = vld [vmem:[#allocation5 + $0x130] sm:$0xff]  ;;  %v2248_v34 = vld [vmem:[#allocation5 + $0x138] sm:$0xff]  ;;  %v1784_v36 = vpack.c.bf16 %v2110_v20, %v2103_v17 }
  0x35   :  { %1651 = vmatprep.mubr.msk.f32.mxu0 %vm107_vm0, %v2103_v17  ;;  %1810 = vmatprep.subr.bf16.mxu0 %v2025_v48  ;;  %v2226_v19 = vpack.c.bf16 %v2217_v12, %v2215_v11  ;;  %v1904_v37 = vpack.i.bf16 %v2142_v40, %v2231_v22  ;;  %v2254_v39 = vld [vmem:[#allocation5 + $0x78] sm:$0xff]  ;;  %v1790_v24 = vpack.c.bf16 %v2231_v22, %v2195_v63 }
  0x36   :  { %v691_v52 = vadd.f32 %v690_v42, %v689_v46  ;;  %1812 = vmatpush1.bf16.msra.mxu0 %v2163_v49  ;;  %v2259_v42 = vpack.c.bf16 %v2248_v34, %v2246_v32  ;;  %v2264_v46 = vld [vmem:[#allocation5 + $0xc0] sm:$0xff]  ;;  %v706_v17 = vsel %vm107_vm0, %v2254_v39, 0.0  ;;  %1785 = vmatpush3.bf16.msra.mxu1 %v1784_v36  ;;  %v2318_v36 = vld [vmem:[#allocation5 + $0xd0] sm:$0xff] }
  0x37   :  { %894 = vxpose.xlu1.b32.cont [5/8] (short) (narrow) %v2156_v45, 40  ;;  %1813 = vmatprep.subr.bf16.mxu0 %v2025_v48 }
  0x38   :  { %1897 = vxpose.xlu0.b32.cont [4/16] (narrow) %v1896_v38, 40  ;;  %1652 = vmatmul.mubr.msk.f32.gmra.mrb[2].mxu0 %vm107_vm0, %v2110_v20  ;;  %v693_v57 = vadd.f32 %v692_v50, %v691_v52  ;;  %v708_v50 = vsel %vm107_vm0, %v2089_v5, 0.0  ;;  %v2275_v52 = vld [vmem:[#allocation5 + $0x148] sm:$0xff] }
  0x39   :  { %1654 = vmatprep.mubr.msk.f32.mxu0 %vm107_vm0, %v2116_v25 }
  0x3a   :  { %v695_v61 = vadd.f32 %v694_v55, %v693_v57  ;;  %1815 = vmatpush1.bf16.msra.mxu0 %v2211_v9  ;;  %v1786_v55 = vpack.c.bf16 %v2175_v54, %v2146_v41  ;;  %v1906_v57 = vpack.i.bf16 %v2158_v47, %v2264_v46 }
  0x3b   :  { %895 = vxpose.xlu1.b32.cont [6/8] (short) (narrow) %v2181_v56, 40  ;;  %1816 = vmatprep.subr.bf16.mxu0 %v2025_v48 }
  0x3c   :  { %1899 = vxpose.xlu0.b32.cont [5/16] (narrow) %v1898_v51, 40  ;;  %1655 = vmatmul.mubr.msk.f32.gmra.mrb[4].mxu0 %vm107_vm0, %v2122_v29  ;;  %v697_v7 = vadd.f32 %v696_v59, %v695_v61  ;;  %v2273_v51 = vld [vmem:[#allocation5 + $0x140] sm:$0xff]  ;;  %v710_v61 = vsel %vm107_vm0, %v2099_v13, 0.0 }
  0x3d   :  { %1657 = vmatprep.mubr.msk.f32.mxu0 %vm107_vm0, %v2134_v35  ;;  %1787 = vmatprep.subr.bf16.mxu1 %v1786_v55 }
  0x3e   :  { %v699_v15 = vadd.f32 %v698_v1, %v697_v7  ;;  %1818 = vmatpush1.bf16.msra.mxu0 %v2226_v19  ;;  %v2291_v1 = vld [vmem:[#allocation5 + $0xc8] sm:$0xff] }
  0x3f   :  { %896 = vxpose.xlu1.b32.cont [7/8] (short) (narrow) %v2205_v4, 40  ;;  %1819 = vmatprep.subr.bf16.mxu0 %v2025_v48  ;;  %v1794_v55 = vpack.c.bf16 %v2291_v1, %v2264_v46 }
  0x40   :  { %1901 = vxpose.xlu0.b32.cont [6/16] (narrow) %v1900_v60, 40  ;;  %1658 = vmatmul.mubr.msk.f32.gmra.mrb[6].mxu0 %vm107_vm0, %v2142_v40  ;;  %v701_v27 = vadd.f32 %v700_v10, %v699_v15  ;;  %v2284_v60 = vpack.c.bf16 %v2275_v52, %v2273_v51  ;;  %v1788_v10 = vpack.c.bf16 %v2122_v29, %v2116_v25  ;;  %v2300_v15 = vld [vmem:[#allocation5 + $0x150] sm:$0xff]  ;;  %v714_v29 = vsel %vm107_vm0, %v2126_v30, 0.0 }
  0x41   :  { %1660 = vmatprep.mubr.msk.f32.mxu0 %vm107_vm0, %v2158_v47 }
  0x42   :  { %v703_v38 = vadd.f32 %v702_v23, %v701_v27  ;;  %1821 = vmatpush1.bf16.msra.mxu0 %v2259_v42  ;;  %v2302_v23 = vld [vmem:[#allocation5 + $0x158] sm:$0xff]  ;;  %v1908_v27 = vpack.i.bf16 %v2169_v53, %v2291_v1  ;;  %1789 = vmatpush3.bf16.msra.mxu1 %v1788_v10  ;;  %v1796_v10 = vpack.c.bf16 %v2169_v53, %v2158_v47 }
  0x43   :  { %897 = vxpose.xlu1.b32.end [8/8] (short) (narrow) %v2239_v26, 40  ;;  %1822 = vmatprep.subr.bf16.mxu0 %v2025_v48  ;;  %v2311_v25 = vpack.c.bf16 %v2302_v23, %v2300_v15 }
  0x44   :  { %1903 = vxpose.xlu0.b32.cont [7/16] (narrow) %v1902_v14, 40  ;;  %1661 = vmatmul.mubr.msk.f32.gmra.mrb[8].mxu0 %vm107_vm0, %v2169_v53  ;;  %v705_v20 = vadd.f32 %v704_v31, %v703_v38  ;;  %v712_v14 = vsel %vm107_vm0, %v2106_v18, 0.0  ;;  %v1792_v38 = vpack.c.bf16 %v2142_v40, %v2134_v35  ;;  %v718_v40 = vsel %vm107_vm0, %v2175_v54, 0.0 }
  0x45   :  { %1663 = vmatprep.mubr.msk.f32.mxu0 %vm107_vm0, %v2183_v58  ;;  %1791 = vmatprep.subr.bf16.mxu1 %v1790_v24  ;;  %v2353_v24 = vld [vmem:[#allocation5 + $0x170] sm:$0xff]  ;;  %v722_v53 = vsel %vm107_vm0, %v2231_v22, 0.0 }
  0x46   :  { %v707_v59 = vadd.f32 %v706_v17, %v705_v20  ;;  %1824 = vmatpush1.bf16.msra.mxu0 %v2284_v60  ;;  %v716_v17 = vsel %vm107_vm0, %v2146_v41, 0.0  ;;  %v2326_v20 = vld [vmem:[#allocation5 + $0x160] sm:$0xff]  ;;  %1793 = vmatpush3.bf16.msra.mxu1 %v1792_v38 }
  0x47   :  { %858 = vxpose.xlu1.b32.start [1/16] (narrow) %v2150_v43, 40  ;;  %1825 = vmatprep.subr.bf16.mxu0 %v2025_v48 }
  0x48   :  { %1905 = vxpose.xlu0.b32.cont [8/16] (narrow) %v1904_v37, 40  ;;  %1664 = vmatmul.mubr.msk.f32.gmra.mrb[10].mxu0 %vm107_vm0, %v2190_v62  ;;  %v709_v7 = vadd.f32 %v708_v50, %v707_v59  ;;  %v2328_v50 = vld [vmem:[#allocation5 + $0x168] sm:$0xff]  ;;  %v1910_v59 = vpack.i.bf16 %v2183_v58, %v2318_v36 }
  0x49   :  { %1666 = vmatprep.mubr.msk.f32.mxu0 %vm107_vm0, %v2207_v8  ;;  %v2338_v35 = vpack.c.bf16 %v2328_v50, %v2326_v20  ;;  %1795 = vmatprep.subr.bf16.mxu1 %v1794_v55  ;;  %v1800_v55 = vpack.c.bf16 %v2190_v62, %v2183_v58  ;;  %v726_v58 = vsel %vm107_vm0, %v2291_v1, 0.0 }
  0x4a   :  { %v711_v31 = vadd.f32 %v710_v61, %v709_v7  ;;  %1827 = vmatpush1.bf16.msra.mxu0 %v2311_v25  ;;  %v2345_v61 = vld [vmem:[#allocation5 + $0xd8] sm:$0xff]  ;;  %1797 = vmatpush3.bf16.msra.mxu1 %v1796_v10 }
  0x4b   :  { %859 = vxpose.xlu1.b32.cont [2/16] (narrow) %v2152_v44, 40  ;;  %1828 = vmatprep.subr.bf16.mxu0 %v2025_v48  ;;  %v2401_v10 = vld [vmem:[#allocation5 + $0xf8] sm:$0xff] }
  0x4c   :  { %1907 = vxpose.xlu0.b32.cont [9/16] (narrow) %v1906_v57, 40  ;;  %1667 = vmatmul.mubr.msk.f32.gmra.mrb[12].mxu0 %vm107_vm0, %v2221_v16  ;;  %v713_v37 = vadd.f32 %v712_v14, %v711_v31  ;;  %v720_v14 = vsel %vm107_vm0, %v2195_v63, 0.0  ;;  %v1798_v31 = vpack.c.bf16 %v2345_v61, %v2318_v36 }
  0x4d   :  { %1669 = vmatprep.mubr.msk.f32.mxu0 %vm107_vm0, %v2241_v28 }
  0x4e   :  { %v715_v57 = vadd.f32 %v714_v29, %v713_v37  ;;  %1830 = vmatpush1.bf16.msra.mxu0 %v2338_v35  ;;  %v2372_v37 = vld [vmem:[#allocation5 + $0xe0] sm:$0xff]  ;;  %1799 = vmatprep.subr.bf16.mxu1 %v1798_v31  ;;  %v728_v31 = vsel %vm107_vm0, %v2318_v36, 0.0 }
  0x4f   :  { %860 = vxpose.xlu1.b32.cont [3/16] (narrow) %v2199_v2, 40  ;;  %1831 = vmatprep.subr.bf16.mxu0 %v2025_v48 }
  0x50   :  { %1909 = vxpose.xlu0.b32.cont [10/16] (narrow) %v1908_v27, 40  ;;  %1670 = vmatmul.mubr.msk.f32.gmra.mrb[14].mxu0 %vm107_vm0, %v2254_v39  ;;  %v717_v7 = vadd.f32 %v716_v17, %v715_v57  ;;  %v2355_v27 = vld [vmem:[#allocation5 + $0x178] sm:$0xff]  ;;  %v2376_v17 = vld [vmem:[#allocation5 + $0xe8] sm:$0xff]  ;;  %v724_v57 = vsel %vm107_vm0, %v2264_v46, 0.0 }
  0x51   :  { %1672 = vmatprep.mubr.msk.f32.mxu0 %vm107_vm0, %v2089_v5  ;;  %v1912_v5 = vpack.i.bf16 %v2190_v62, %v2345_v61  ;;  %v2365_v47 = vpack.c.bf16 %v2355_v27, %v2353_v24  ;;  %1801 = vmatpush3.bf16.msra.mxu1 %v1800_v55 }
  0x52   :  { %v719_v29 = vadd.f32 %v718_v40, %v717_v7  ;;  %v2390_v40 = vpack.c.bf16 %v2091_v6, %v2084_v0  ;;  %v2399_v7 = vld [vmem:[#allocation5 + $0xf0] sm:$0xff] }
  0x53   :  { %861 = vxpose.xlu1.b32.cont [4/16] (narrow) %v2201_v3, 40  ;;  %1833 = vmatpush1.bf16.msra.mxu0 %v2365_v47 }
  0x54   :  { %1911 = vxpose.xlu0.b32.cont [11/16] (narrow) %v1910_v59, 40  ;;  %1673 = vmatmul.mubr.msk.f32.gmra.mrb[16].mxu0 %vm107_vm0, %v2099_v13  ;;  %v721_v38 = vadd.f32 %v720_v14, %v719_v29  ;;  %v1802_v59 = vpack.c.bf16 %v2376_v17, %v2372_v37  ;;  %v1804_v14 = vpack.c.bf16 %v2221_v16, %v2207_v8 }
  0x55   :  { %1675 = vmatprep.mubr.msk.f32.mxu0 %vm107_vm0, %v2106_v18  ;;  %v1914_v18 = vpack.i.bf16 %v2207_v8, %v2372_v37  ;;  %v1806_v29 = vpack.c.bf16 %v2401_v10, %v2399_v7  ;;  %1834 = vmatprep.subr.bf16.mxu0 %v2025_v48  ;;  %v730_v8 = vsel %vm107_vm0, %v2345_v61, 0.0 }
  0x56   :  { %v723_v13 = vadd.f32 %v722_v53, %v721_v38  ;;  %1803 = vmatprep.subr.bf16.mxu1 %v1802_v59  ;;  %v732_v38 = vsel %vm107_vm0, %v2372_v37, 0.0 }
  0x57   :  { %862 = vxpose.xlu1.b32.cont [5/16] (narrow) %v2215_v11, 40  ;;  %1836 = vmatpush1.bf16.msra.mxu0 %v2390_v40 }
  0x58   :  { %1913 = vxpose.xlu0.b32.cont [12/16] (narrow) %v1912_v5, 40  ;;  %1676 = vmatmul.mubr.msk.f32.gmra.mrb[18].mxu0 %vm107_vm0, %v2126_v30  ;;  %v725_v62 = vadd.f32 %v724_v57, %v723_v13  ;;  %v2415_v5 = vpack.c.bf16 %v2132_v33, %v2112_v21  ;;  %v1918_v57 = vpack.i.bf16 %v2241_v28, %v2399_v7 }
  0x59   :  { %1678 = vmatprep.mubr.msk.f32.mxu0 %vm107_vm0, %v2146_v41  ;;  %v1916_v41 = vpack.i.bf16 %v2221_v16, %v2376_v17  ;;  %1805 = vmatpush3.bf16.msra.mxu1 %v1804_v14  ;;  %v1808_v16 = vpack.c.bf16 %v2254_v39, %v2241_v28  ;;  %v736_v28 = vsel %vm107_vm0, %v2399_v7, 0.0  ;;  %v742_v14 = vsel %vm107_vm0, %v2152_v44, 0.0 }
  0x5a   :  { %v727_v30 = vadd.f32 %v726_v58, %v725_v62  ;;  %1807 = vmatprep.subr.bf16.mxu1 %v1806_v29  ;;  %1837 = vmatprep.subr.bf16.mxu0 %v2025_v48  ;;  %v746_v29 = vsel %vm107_vm0, %v2201_v3, 0.0 }
  0x5b   :  { %863 = vxpose.xlu1.b32.cont [6/16] (narrow) %v2217_v12, 40  ;;  %1839 = vmatpush1.bf16.msra.mxu0 %v2415_v5 }
  0x5c   :  { %1915 = vxpose.xlu0.b32.cont [13/16] (narrow) %v1914_v18, 40  ;;  %1679 = vmatmul.mubr.msk.f32.gmra.mrb[20].mxu0 %vm107_vm0, %v2175_v54  ;;  %v729_v53 = vadd.f32 %v728_v31, %v727_v30  ;;  %v2434_v54 = vpack.c.bf16 %v2181_v56, %v2156_v45  ;;  %v1920_v18 = vpack.i.bf16 %v2254_v39, %v2401_v10  ;;  %v740_v39 = vsel %vm107_vm0, %v2150_v43, 0.0 }
  0x5d   :  { %1681 = vmatprep.mubr.msk.f32.mxu0 %vm107_vm0, %v2195_v63  ;;  %v734_v63 = vsel %vm107_vm0, %v2376_v17, 0.0  ;;  %1809 = vmatpush3.bf16.msra.mxu1 %v1808_v16 }
  0x5e   :  { %v731_v55 = vadd.f32 %v730_v8, %v729_v53  ;;  %1858 = vmatprep.subr.bf16.mxu1 %v2025_v48  ;;  %1840 = vmatprep.subr.bf16.mxu0 %v2025_v48  ;;  %v754_v53 = vsel %vm107_vm0, %v2248_v34, 0.0 }
  0x5f   :  { %864 = vxpose.xlu1.b32.cont [7/16] (narrow) %v2246_v32, 40  ;;  %1842 = vmatpush1.bf16.msra.mxu0 %v2434_v54 }
  0x60   :  { %1917 = vxpose.xlu0.b32.cont [14/16] (narrow) %v1916_v41, 40  ;;  %1682 = vmatmul.mubr.msk.f32.gmra.mrb[22].mxu0 %vm107_vm0, %v2231_v22  ;;  %v733_v59 = vadd.f32 %v732_v38, %v731_v55  ;;  %v2452_v22 = vpack.c.bf16 %v2239_v26, %v2205_v4  ;;  %v750_v41 = vsel %vm107_vm0, %v2217_v12, 0.0  ;;  %v758_v38 = vsel %vm107_vm0, %v2275_v52, 0.0 }
  0x61   :  { %1684 = vmatprep.mubr.msk.f32.mxu0 %vm107_vm0, %v2264_v46  ;;  %v738_v46 = vsel %vm107_vm0, %v2401_v10, 0.0  ;;  %1843 = vmatprep.subr.bf16.mxu0 %v2025_v48 }
  0x62   :  { %v735_v13 = vadd.f32 %v734_v63, %v733_v59  ;;  %v766_v59 = vsel %vm107_vm0, %v2328_v50, 0.0 }
  0x63   :  { %865 = vxpose.xlu1.b32.cont [8/16] (narrow) %v2248_v34, 40  ;;  %1845 = vmatpush1.bf16.msra.mxu0 %v2452_v22 }
  0x64   :  { %1919 = vxpose.xlu0.b32.cont [15/16] (narrow) %v1918_v57, 40  ;;  %1685 = vmatmul.mubr.msk.f32.gmra.mrb[24].mxu0 %vm107_vm0, %v2291_v1  ;;  %v737_v58 = vadd.f32 %v736_v28, %v735_v13  ;;  %v762_v57 = vsel %vm107_vm0, %v2302_v23, 0.0  ;;  %v770_v13 = vsel %vm107_vm0, %v2355_v27, 0.0 }
  0x65   :  { %1687 = vmatprep.mubr.msk.f32.mxu0 %vm107_vm0, %v2318_v36  ;;  %v744_v36 = vsel %vm107_vm0, %v2199_v2, 0.0 }
  0x66   :  { %v739_v62 = vadd.f32 %v738_v46, %v737_v58  ;;  %v774_v46 = vsel %vm107_vm0, %v2091_v6, 0.0 }
  0x67   :  { %866 = vxpose.xlu1.b32.cont [9/16] (narrow) %v2273_v51, 40 }
  0x68   :  { %1921 = vxpose.xlu0.b32.end [16/16] (narrow) %v1920_v18, 40  ;;  %1688 = vmatmul.mubr.msk.f32.gmra.mrb[26].mxu0 %vm107_vm0, %v2345_v61  ;;  %v741_v1 = vadd.f32 %v740_v39, %v739_v62  ;;  %v748_v61 = vsel %vm107_vm0, %v2215_v11, 0.0 }
  0x69   :  { %1690 = vmatprep.mubr.msk.f32.mxu0 %vm107_vm0, %v2372_v37 }
  0x6a   :  { %v743_v31 = vadd.f32 %v742_v14, %v741_v1 }
  0x6b   :  { %867 = vxpose.xlu1.b32.cont [10/16] (narrow) %v2275_v52, 40 }
  0x6c   :  { %1691 = vmatmul.mubr.msk.f32.gmra.mrb[28].mxu0 %vm107_vm0, %v2376_v17  ;;  %v745_v30 = vadd.f32 %v744_v36, %v743_v31  ;;  %v752_v17 = vsel %vm107_vm0, %v2246_v32, 0.0 }
  0x6d   :  { %1693 = vmatprep.mubr.msk.f32.mxu0 %vm107_vm0, %v2399_v7 }
  0x6e   :  { %v747_v37 = vadd.f32 %v746_v29, %v745_v30 }
  0x6f   :  { %868 = vxpose.xlu1.b32.cont [11/16] (narrow) %v2300_v15, 40 }
  0x70   :  { %1694 = vmatmul.mubr.msk.f32.gmra.mrb[30].mxu0 %vm107_vm0, %v2401_v10  ;;  %v749_v8 = vadd.f32 %v748_v61, %v747_v37  ;;  %v756_v10 = vsel %vm107_vm0, %v2273_v51, 0.0 }
  0x71   :  { %1696 = vmatprep.mubr.msk.f32.mxu0 %vm107_vm0, %v2150_v43 }
  0x72   :  { %v751_v7 = vadd.f32 %v750_v41, %v749_v8 }
  0x73   :  { %869 = vxpose.xlu1.b32.cont [12/16] (narrow) %v2302_v23, 40 }
  0x74   :  { %1697 = vmatmul.mubr.msk.f32.gmra.mrb[32].mxu0 %vm107_vm0, %v2152_v44  ;;  %v753_v16 = vadd.f32 %v752_v17, %v751_v7  ;;  %v760_v44 = vsel %vm107_vm0, %v2300_v15, 0.0 }
  0x75   :  { %1699 = vmatprep.mubr.msk.f32.mxu0 %vm107_vm0, %v2199_v2 }
  0x76   :  { %v755_v43 = vadd.f32 %v754_v53, %v753_v16 }
  0x77   :  { %870 = vxpose.xlu1.b32.cont [13/16] (narrow) %v2326_v20, 40 }
  0x78   :  { %1700 = vmatmul.mubr.msk.f32.gmra.mrb[34].mxu0 %vm107_vm0, %v2201_v3  ;;  %v757_v55 = vadd.f32 %v756_v10, %v755_v43  ;;  %v764_v3 = vsel %vm107_vm0, %v2326_v20, 0.0 }
  0x79   :  { %1702 = vmatprep.mubr.msk.f32.mxu0 %vm107_vm0, %v2215_v11 }
  0x7a   :  { %v759_v2 = vadd.f32 %v758_v38, %v757_v55 }
  0x7b   :  { %871 = vxpose.xlu1.b32.cont [14/16] (narrow) %v2328_v50, 40 }
  0x7c   :  { %1703 = vmatmul.mubr.msk.f32.gmra.mrb[36].mxu0 %vm107_vm0, %v2217_v12  ;;  %v761_v63 = vadd.f32 %v760_v44, %v759_v2  ;;  %v768_v12 = vsel %vm107_vm0, %v2353_v24, 0.0  ;;  %v2614_v2 = vld [vmem:[#allocation8 + $0x18] sm:$0xff] }
  0x7d   :  { %1705 = vmatprep.mubr.msk.f32.mxu0 %vm107_vm0, %v2246_v32 }
  0x7e   :  { %v763_v11 = vadd.f32 %v762_v57, %v761_v63 }
  0x7f   :  { %872 = vxpose.xlu1.b32.cont [15/16] (narrow) %v2353_v24, 40 }
  0x80   :  { %1706 = vmatmul.mubr.msk.f32.gmra.mrb[38].mxu0 %vm107_vm0, %v2248_v34  ;;  %v765_v28 = vadd.f32 %v764_v3, %v763_v11  ;;  %v772_v34 = vsel %vm107_vm0, %v2084_v0, 0.0 }
  0x81   :  { %1708 = vmatprep.mubr.msk.f32.mxu0 %vm107_vm0, %v2273_v51 }
  0x82   :  { %v767_v32 = vadd.f32 %v766_v59, %v765_v28  ;;  %v2026_v28 = vmov 0.0  }
  0x83   :  { %873 = vxpose.xlu1.b32.end [16/16] (narrow) %v2355_v27, 40 }
  0x84   :  { %1709 = vmatmul.mubr.msk.f32.gmra.mrb[40].mxu0 %vm107_vm0, %v2275_v52  ;;  %v769_v18 = vadd.f32 %v768_v12, %v767_v32  ;;  %v776_v52 = vsel %vm107_vm0, %v2112_v21, 0.0 }
  0x85   :  { %1711 = vmatprep.mubr.msk.f32.mxu0 %vm107_vm0, %v2300_v15  ;;  %v778_v15 = vsel %vm107_vm0, %v2132_v33, 0.0 }
  0x86   :  { %v771_v51 = vadd.f32 %v770_v13, %v769_v18 }
  0x88   :  { %1712 = vmatmul.mubr.msk.f32.gmra.mrb[42].mxu0 %vm107_vm0, %v2302_v23  ;;  %v773_v58 = vadd.f32 %v772_v34, %v771_v51  ;;  %v780_v23 = vsel %vm107_vm0, %v2156_v45, 0.0 }
  0x89   :  { %1714 = vmatprep.mubr.msk.f32.mxu0 %vm107_vm0, %v2326_v20  ;;  %v782_v20 = vsel %vm107_vm0, %v2181_v56, 0.0 }
  0x8a   :  { %v775_v39 = vadd.f32 %v774_v46, %v773_v58 }
  0x8c   :  { %1715 = vmatmul.mubr.msk.f32.gmra.mrb[44].mxu0 %vm107_vm0, %v2328_v50  ;;  %v777_v62 = vadd.f32 %v776_v52, %v775_v39  ;;  %v784_v50 = vsel %vm107_vm0, %v2205_v4, 0.0 }
  0x8d   :  { %1717 = vmatprep.mubr.msk.f32.mxu0 %vm107_vm0, %v2353_v24  ;;  %v786_v24 = vsel %vm107_vm0, %v2239_v26, 0.0 }
  0x8e   :  { %v779_v14 = vadd.f32 %v778_v15, %v777_v62 }
  0x90   :  { %1718 = vmatmul.mubr.msk.f32.gmra.mrb[46].mxu0 %vm107_vm0, %v2355_v27  ;;  %v781_v1 = vadd.f32 %v780_v23, %v779_v14 }
  0x91   :  { %1720 = vmatprep.mubr.msk.f32.mxu0 %vm107_vm0, %v2084_v0 }
  0x92   :  { %v783_v36 = vadd.f32 %v782_v20, %v781_v1 }
  0x94   :  { %1721 = vmatmul.mubr.msk.f32.gmra.mrb[48].mxu0 %vm107_vm0, %v2091_v6  ;;  %v785_v31 = vadd.f32 %v784_v50, %v783_v36  ;;  %v2620_v50 = vld [vmem:[#allocation8 + $0x20] sm:$0xf] }
  0x95   :  { %1723 = vmatprep.mubr.msk.f32.mxu0 %vm107_vm0, %v2112_v21 }
  0x96   :  { %v787_v29 = vadd.f32 %v786_v24, %v785_v31 }
  0x98   :  { %1724 = vmatmul.mubr.msk.f32.gmra.mrb[50].mxu0 %vm107_vm0, %v2132_v33  ;;  %v788_v27 = vrot.slane %v787_v29, 4 }
  0x99   :  { %1726 = vmatprep.mubr.msk.f32.mxu0 %vm107_vm0, %v2156_v45 }
  0x9a   :  { %v789_v0 = vadd.f32 %v788_v27, %v787_v29 }
  0x9c   :  { %1727 = vmatmul.mubr.msk.f32.gmra.mrb[52].mxu0 %vm107_vm0, %v2181_v56  ;;  %v790_v30 = vrot.slane %v789_v0, 2 }
  0x9d   :  { %1729 = vmatprep.mubr.msk.f32.mxu0 %vm107_vm0, %v2205_v4 }
  0x9e   :  { %v791_v6 = vadd.f32 %v790_v30, %v789_v0 }
  0xa0   :  { %1730 = vmatmul.mubr.msk.f32.gmra.mrb[54].mxu0 %vm107_vm0, %v2239_v26  ;;  %v792_v21 = vrot.slane %v791_v6, 1 }
  0xa2   :  { %v793_v61 = vadd.f32 %v792_v21, %v791_v6 }
  0xa4   :  { %1127 = vst.msk [vmem:[#allocation3] sm:$0x1] %vm1126_vm2, %v793_v61 }
  0xa7   :  { %v906_v33 = vpop.trf.xlu1 }
  0xa8   :  { %1501 = vmatprep.mubr.msk.f32.mxu0 %vm922_vm3, %v906_v33 }
  0xab   :  { %v907_v4 = vpop.trf.xlu1  ;;  %v1178_v24 = vld [vmem:[#allocation3] sm:$0x1] }
  0xac   :  { %v1922_v45 = vpop.trf.xlu0 }
  0xad   :  { %v1923_v37 = vunpack.i.l.bf16 %v1922_v45  ;;  %v1926_v41 = vunpack.i.h.bf16 %v1922_v45 }
  0xaf   :  { %1002 = vmatprep.mubr.f32.mxu1 %v1923_v37  ;;  %v908_v16 = vpop.trf.xlu1 }
  0xb0   :  { %1003 = vmatmul.mubr.f32.vlgmr.msra.gmra.mrb[0].mxu1 %v1926_v41  ;;  %v1927_v56 = vpop.trf.xlu0 }
  0xb1   :  { %1870 = vmatpush1.bf16.msra.mxu1 %v2163_v49  ;;  %v1928_v8 = vunpack.i.l.bf16 %v1927_v56  ;;  %v1931_v17 = vunpack.i.h.bf16 %v1927_v56 }
  0xb2   :  { %1859 = vmatprep.subr.bf16.mxu1 %v2025_v48 }
  0xb3   :  { %1007 = vmatprep.mubr.f32.mxu1 %v1928_v8 }
  0xb4   :  { %v1932_v26 = vpop.trf.xlu0  ;;  %1008 = vmatmul.mubr.f32.gmra.mrb[2].mxu1 %v1931_v17 }
  0xb5   :  { %1871 = vmatpush1.bf16.msra.mxu1 %v2211_v9  ;;  %v1933_v7 = vunpack.i.l.bf16 %v1932_v26  ;;  %v1936_v53 = vunpack.i.h.bf16 %v1932_v26  ;;  %v909_v9 = vpop.trf.xlu1 }
  0xb6   :  { %1860 = vmatprep.subr.bf16.mxu1 %v2025_v48 }
  0xb7   :  { %1012 = vmatprep.mubr.f32.mxu1 %v1933_v7 }
  0xb8   :  { %v1937_v10 = vpop.trf.xlu0  ;;  %1013 = vmatmul.mubr.f32.gmra.mrb[4].mxu1 %v1936_v53 }
  0xb9   :  { %1872 = vmatpush1.bf16.msra.mxu1 %v2226_v19  ;;  %v1938_v49 = vunpack.i.l.bf16 %v1937_v10  ;;  %v1941_v43 = vunpack.i.h.bf16 %v1937_v10  ;;  %v910_v19 = vpop.trf.xlu1 }
  0xba   :  { %1861 = vmatprep.subr.bf16.mxu1 %v2025_v48 }
  0xbb   :  { %1017 = vmatprep.mubr.f32.mxu1 %v1938_v49 }
  0xbc   :  { %v1942_v38 = vpop.trf.xlu0  ;;  %1018 = vmatmul.mubr.f32.gmra.mrb[6].mxu1 %v1941_v43 }
  0xbd   :  { %1873 = vmatpush1.bf16.msra.mxu1 %v2259_v42  ;;  %v1946_v55 = vunpack.i.h.bf16 %v1942_v38  ;;  %v1943_v44 = vunpack.i.l.bf16 %v1942_v38 }
  0xbe   :  { %1862 = vmatprep.subr.bf16.mxu1 %v2025_v48 }
  0xbf   :  { %1022 = vmatprep.mubr.f32.mxu1 %v1943_v44 }
  0xc0   :  { %1023 = vmatmul.mubr.f32.gmra.mrb[8].mxu1 %v1946_v55 }
  0xc1   :  { %1874 = vmatpush1.bf16.msra.mxu1 %v2284_v60  ;;  %1502 = vmatprep.mubr.msk.f32.mxu1 %vm922_vm3, %v907_v4 }
  0xc2   :  { %1863 = vmatprep.subr.bf16.mxu1 %v2025_v48 }
  0xc5   :  { %1875 = vmatpush1.bf16.msra.mxu1 %v2311_v25 }
  0xc6   :  { %1864 = vmatprep.subr.bf16.mxu1 %v2025_v48 }
  0xc7   :  { %v874_v42 = vpop.trf.xlu1 }
  0xc8   :  { %1093 = vmatmul.mubr.f32.vlgmr.msra.gmra.mrb[56].mxu0 %v874_v42 }
  0xc9   :  { %1876 = vmatpush1.bf16.msra.mxu1 %v2338_v35 }
  0xca   :  { %1865 = vmatprep.subr.bf16.mxu1 %v2025_v48 }
  0xcb   :  { %v875_v60 = vpop.trf.xlu1 }
  0xcd   :  { %1877 = vmatpush1.bf16.msra.mxu1 %v2365_v47 }
  0xce   :  { %1866 = vmatprep.subr.bf16.mxu1 %v2025_v48 }
  0xcf   :  { %v876_v25 = vpop.trf.xlu1 }
  0xd1   :  { %1878 = vmatpush1.bf16.msra.mxu1 %v2390_v40  ;;  %v2606_v40 = vld [vmem:[#allocation8] sm:$0xff] }
  0xd2   :  { %1867 = vmatprep.subr.bf16.mxu1 %v2025_v48 }
  0xd3   :  { %v877_v35 = vpop.trf.xlu1 }
  0xd5   :  { %1879 = vmatpush1.bf16.msra.mxu1 %v2415_v5  ;;  %v2608_v5 = vld [vmem:[#allocation8 + $0x8] sm:$0xff] }
  0xd6   :  { %1868 = vmatprep.subr.bf16.mxu1 %v2025_v48 }
  0xd7   :  { %v878_v47 = vpop.trf.xlu1 }
  0xd9   :  { %1880 = vmatpush1.bf16.msra.mxu1 %v2434_v54  ;;  %v2610_v54 = vld [vmem:[#allocation8 + $0x10] sm:$0xff] }
  0xda   :  { %1869 = vmatprep.subr.bf16.mxu1 %v2025_v48  ;;  %v1850_v63 = vpack.c.bf16 %v2614_v2, %v2610_v54 }
  0xdd   :  { %1881 = vmatpush1.bf16.msra.mxu1 %v2452_v22  ;;  %v1847_v22 = vpack.c.bf16 %v2608_v5, %v2606_v40 }
  0xde   :  { %1846 = vmatprep.subr.bf16.mxu1 %v2025_v48 }
  0xe0   :  { %1098 = vmatmul.mubr.f32.vlgmr.msra.gmra.mrb[10].mxu1 %v875_v60 }
  0xe1   :  { %1503 = vmatprep.mubr.msk.f32.mxu1 %vm922_vm3, %v908_v16  ;;  %1848 = vmatpush3.bf16.msra.mxu1 %v1847_v22 }
  0xe2   :  { %1849 = vmatprep.subr.bf16.mxu1 %v2025_v48 }
  0xe4   :  { %1103 = vmatmul.mubr.f32.gmra.mrb[12].mxu1 %v876_v25 }
  0xe5   :  { %1504 = vmatprep.mubr.msk.f32.mxu1 %vm922_vm3, %v909_v9  ;;  %1851 = vmatpush3.bf16.msra.mxu1 %v1850_v63 }
  0xe6   :  { %1740 = vmatprep.subr.mxu1 %v2026_v28 }
  0xe8   :  { %1108 = vmatmul.mubr.f32.gmra.mrb[14].mxu1 %v877_v35 }
  0xe9   :  { %1505 = vmatprep.mubr.msk.f32.mxu1 %vm922_vm3, %v910_v19  ;;  %1741 = vmatpush3.msk.msra.mxu1 %vm276_vm1, %v2620_v50 }
  0xea   :  { %1852 = vmatprep.subr.bf16.mxu1 %v2025_v48 }
  0xec   :  { %1113 = vmatmul.mubr.f32.gmra.mrb[16].mxu1 %v878_v47 }
  0xed   :  { %1742 = vmatprep.mubr.msk.f32.mxu1 %vm2027_vm4, %v2026_v28 }
  0xf0   :  { %1743 = vmatmul.mubr.msk.f32.vlgmr.msra.gmra.mrb[18].mxu1 %vm107_vm0, %v1178_v24 }
  0xf1   :  { %1854 = vmatpush3.bf16.msra.mxu1 %v1847_v22  ;;  %1755 = vmatprep.mubr.msk.f32.mxu1 %vm2027_vm4, %v2026_v28 }
  0xf2   :  { %1855 = vmatprep.subr.bf16.mxu1 %v2025_v48 }
  0xf5   :  { %1857 = vmatpush3.bf16.msra.mxu1 %v1850_v63 }
  0xf6   :  { %1753 = vmatprep.subr.mxu1 %v2026_v28 }
  0xf9   :  { %1754 = vmatpush3.msk.msra.mxu1 %vm276_vm1, %v2620_v50 }
 0x107   :  { %v1650_v57 = vpop.f32.mrb[0].mxu0 }
 0x108   :  { %v346_v3 = vpop.f32.mrb[1].mxu0 }
 0x10b   :  { %v1653_v11 = vpop.f32.mrb[2].mxu0 }
 0x10c   :  { %v356_v59 = vpop.f32.mrb[3].mxu0 }
 0x10f   :  { %v1656_v12 = vpop.f32.mrb[4].mxu0 }
 0x110   :  { %v638_v32 = vmax.f32 %v1650_v57, %v1656_v12  ;;  %v366_v13 = vpop.f32.mrb[5].mxu0 }
 0x111   :  { %v625_v18 = vmax.f32 %v346_v3, %v366_v13 }
 0x113   :  { %v1659_v34 = vpop.f32.mrb[6].mxu0 }
 0x114   :  { %v664_v51 = vmax.f32 %v1653_v11, %v1659_v34  ;;  %v376_v46 = vpop.f32.mrb[7].mxu0 }
 0x115   :  { %v651_v58 = vmax.f32 %v356_v59, %v376_v46 }
 0x117   :  { %v1662_v52 = vpop.f32.mrb[8].mxu0 }
 0x118   :  { %v639_v39 = vmax.f32 %v638_v32, %v1662_v52  ;;  %v386_v15 = vpop.f32.mrb[9].mxu0 }
 0x119   :  { %v626_v62 = vmax.f32 %v625_v18, %v386_v15 }
 0x11b   :  { %v1665_v23 = vpop.f32.mrb[10].mxu0 }
 0x11c   :  { %v665_v14 = vmax.f32 %v664_v51, %v1665_v23  ;;  %v396_v20 = vpop.f32.mrb[11].mxu0 }
 0x11d   :  { %v652_v1 = vmax.f32 %v651_v58, %v396_v20 }
 0x11f   :  { %v1668_v36 = vpop.f32.mrb[12].mxu0 }
 0x120   :  { %v640_v31 = vmax.f32 %v639_v39, %v1668_v36  ;;  %v406_v29 = vpop.f32.mrb[13].mxu0 }
 0x121   :  { %v627_v27 = vmax.f32 %v626_v62, %v406_v29 }
 0x123   :  { %v1671_v0 = vpop.f32.mrb[14].mxu0 }
 0x124   :  { %v666_v30 = vmax.f32 %v665_v14, %v1671_v0  ;;  %v416_v6 = vpop.f32.mrb[15].mxu0 }
 0x125   :  { %v653_v21 = vmax.f32 %v652_v1, %v416_v6 }
 0x127   :  { %v1674_v61 = vpop.f32.mrb[16].mxu0 }
 0x128   :  { %v641_v33 = vmax.f32 %v640_v31, %v1674_v61  ;;  %v426_v45 = vpop.f32.mrb[17].mxu0 }
 0x129   :  { %v628_v37 = vmax.f32 %v627_v27, %v426_v45 }
 0x12b   :  { %v1677_v41 = vpop.f32.mrb[18].mxu0 }
 0x12c   :  { %v667_v56 = vmax.f32 %v666_v30, %v1677_v41  ;;  %v436_v4 = vpop.f32.mrb[19].mxu0 }
 0x12d   :  { %v654_v8 = vmax.f32 %v653_v21, %v436_v4 }
 0x12f   :  { %v1680_v17 = vpop.f32.mrb[20].mxu0 }
 0x130   :  { %v642_v48 = vmax.f32 %v641_v33, %v1680_v17  ;;  %v446_v26 = vpop.f32.mrb[21].mxu0 }
 0x131   :  { %v629_v7 = vmax.f32 %v628_v37, %v446_v26 }
 0x133   :  { %v1683_v53 = vpop.f32.mrb[22].mxu0 }
 0x134   :  { %v668_v16 = vmax.f32 %v667_v56, %v1683_v53  ;;  %v456_v10 = vpop.f32.mrb[23].mxu0 }
 0x135   :  { %v655_v49 = vmax.f32 %v654_v8, %v456_v10 }
 0x137   :  { %v1686_v43 = vpop.f32.mrb[24].mxu0 }
 0x138   :  { %v643_v38 = vmax.f32 %v642_v48, %v1686_v43  ;;  %v466_v9 = vpop.f32.mrb[25].mxu0 }
 0x139   :  { %v630_v55 = vmax.f32 %v629_v7, %v466_v9 }
 0x13b   :  { %v1689_v44 = vpop.f32.mrb[26].mxu0 }
 0x13c   :  { %v669_v19 = vmax.f32 %v668_v16, %v1689_v44  ;;  %v476_v42 = vpop.f32.mrb[27].mxu0 }
 0x13d   :  { %v656_v60 = vmax.f32 %v655_v49, %v476_v42 }
 0x13f   :  { %v1692_v25 = vpop.f32.mrb[28].mxu0 }
 0x140   :  { %v644_v35 = vmax.f32 %v643_v38, %v1692_v25  ;;  %v486_v47 = vpop.f32.mrb[29].mxu0 }
 0x141   :  { %v631_v22 = vmax.f32 %v630_v55, %v486_v47 }
 0x143   :  { %v1695_v57 = vpop.f32.mrb[30].mxu0 }
 0x144   :  { %v670_v63 = vmax.f32 %v669_v19, %v1695_v57  ;;  %v496_v3 = vpop.f32.mrb[31].mxu0 }
 0x145   :  { %v657_v11 = vmax.f32 %v656_v60, %v496_v3 }
 0x147   :  { %v1698_v59 = vpop.f32.mrb[32].mxu0 }
 0x148   :  { %v645_v12 = vmax.f32 %v644_v35, %v1698_v59  ;;  %v506_v32 = vpop.f32.mrb[33].mxu0 }
 0x149   :  { %v632_v13 = vmax.f32 %v631_v22, %v506_v32 }
 0x14b   :  { %v1701_v18 = vpop.f32.mrb[34].mxu0 }
 0x14c   :  { %v671_v34 = vmax.f32 %v670_v63, %v1701_v18  ;;  %v516_v51 = vpop.f32.mrb[35].mxu0 }
 0x14d   :  { %v658_v46 = vmax.f32 %v657_v11, %v516_v51 }
 0x14f   :  { %v1704_v58 = vpop.f32.mrb[36].mxu0 }
 0x150   :  { %v646_v52 = vmax.f32 %v645_v12, %v1704_v58  ;;  %v526_v39 = vpop.f32.mrb[37].mxu0 }
 0x151   :  { %v633_v15 = vmax.f32 %v632_v13, %v526_v39 }
 0x153   :  { %v1707_v62 = vpop.f32.mrb[38].mxu0 }
 0x154   :  { %v672_v23 = vmax.f32 %v671_v34, %v1707_v62  ;;  %v536_v14 = vpop.f32.mrb[39].mxu0 }
 0x155   :  { %v659_v20 = vmax.f32 %v658_v46, %v536_v14 }
 0x157   :  { %v1710_v1 = vpop.f32.mrb[40].mxu0 }
 0x158   :  { %v647_v36 = vmax.f32 %v646_v52, %v1710_v1  ;;  %v546_v24 = vpop.f32.mrb[41].mxu0 }
 0x159   :  { %v634_v31 = vmax.f32 %v633_v15, %v546_v24 }
 0x15b   :  { %v1713_v29 = vpop.f32.mrb[42].mxu0 }
 0x15c   :  { %v673_v27 = vmax.f32 %v672_v23, %v1713_v29  ;;  %v556_v0 = vpop.f32.mrb[43].mxu0 }
 0x15d   :  { %v660_v30 = vmax.f32 %v659_v20, %v556_v0 }
 0x15f   :  { %v1716_v6 = vpop.f32.mrb[44].mxu0 }
 0x160   :  { %v648_v21 = vmax.f32 %v647_v36, %v1716_v6  ;;  %v566_v61 = vpop.f32.mrb[45].mxu0 }
 0x161   :  { %v635_v33 = vmax.f32 %v634_v31, %v566_v61 }
 0x163   :  { %v1719_v45 = vpop.f32.mrb[46].mxu0 }
 0x164   :  { %v674_v37 = vmax.f32 %v673_v27, %v1719_v45  ;;  %v576_v41 = vpop.f32.mrb[47].mxu0 }
 0x165   :  { %v661_v56 = vmax.f32 %v660_v30, %v576_v41 }
 0x167   :  { %v1722_v4 = vpop.f32.mrb[48].mxu0 }
 0x168   :  { %v2634_v8 = vmax.f32 %v648_v21, %v1722_v4  ;;  %v586_v17 = vpop.f32.mrb[49].mxu0 }
 0x169   :  { %v2636_v48 = vmax.f32 %v635_v33, %v586_v17 }
 0x16b   :  { %v1725_v26 = vpop.f32.mrb[50].mxu0 }
 0x16c   :  { %v2638_v7 = vmax.f32 %v674_v37, %v1725_v26  ;;  %v596_v53 = vpop.f32.mrb[51].mxu0 }
 0x16d   :  { %v2640_v16 = vmax.f32 %v661_v56, %v596_v53 }
 0x16f   :  { %v2642_v10 = vpop.f32.mrb[52].mxu0 }
 0x170   :  { %v650_v49 = vmax.f32 %v2634_v8, %v2642_v10  ;;  %v2646_v43 = vpop.f32.mrb[53].mxu0 }
 0x171   :  { %v637_v38 = vmax.f32 %v2636_v48, %v2646_v43 }
 0x173   :  { %v2650_v9 = vpop.f32.mrb[54].mxu0 }
 0x174   :  { %v676_v55 = vmax.f32 %v2638_v7, %v2650_v9  ;;  %v2654_v44 = vpop.f32.mrb[55].mxu0 }
 0x175   :  { %v663_v19 = vmax.f32 %v2640_v16, %v2654_v44 }
 0x183   :  { %v1607_v42 = vpop.f32.mrb[0].mxu1 }
 0x184   :  { %v1608_v60 = vpop.f32.mrb[1].mxu1 }
 0x185   :  { %v1609_v25 = vadd.f32 %v1608_v60, %v1607_v42 }
 0x187   :  { %v1610_v35 = vpop.f32.mrb[2].mxu1 }
 0x188   :  { %v1611_v47 = vpop.f32.mrb[3].mxu1 }
 0x189   :  { %v1612_v22 = vadd.f32 %v1611_v47, %v1610_v35 }
 0x18b   :  { %v1613_v57 = vpop.f32.mrb[4].mxu1 }
 0x18c   :  { %v1614_v63 = vpop.f32.mrb[5].mxu1 }
 0x18d   :  { %v1615_v3 = vadd.f32 %v1614_v63, %v1613_v57 }
 0x18f   :  { %v1616_v11 = vpop.f32.mrb[6].mxu1 }
 0x190   :  { %v1617_v59 = vpop.f32.mrb[7].mxu1 }
 0x191   :  { %v1618_v12 = vadd.f32 %v1617_v59, %v1616_v11 }
 0x193   :  { %v1619_v32 = vpop.f32.mrb[8].mxu1 }
 0x194   :  { %v1620_v13 = vpop.f32.mrb[9].mxu1 }
 0x195   :  { %v1621_v18 = vadd.f32 %v1620_v13, %v1619_v32 }
 0x19b   :  { %v1094_v34 = vpop.f32.mrb[56].mxu0 }
 0x19c   :  { %v1095_v51 = vadd.f32 %v1609_v25, %v1094_v34  ;;  %v1096_v46 = vpop.f32.mrb[57].mxu0 }
 0x19e   :  { %1128 = vst.msk [vmem:[#allocation4] sm:$0xff] %vm107_vm0, %v1095_v51 }
 0x1a5   :  { %v1256_v58 = vld [vmem:[#allocation4] sm:$0xff] }
 0x1a6   :  { %1756 = vmatmul.mubr.msk.f32.vlgmr.msra.gmra.mrb[20].mxu1 %vm107_vm0, %v1256_v58  ;;  %v1399_v58 = vlaneseq }
 0x1a7   :  { %1758 = vmatprep.mubr.msk.f32.mxu1 %vm2027_vm4, %v2026_v28 }
 0x1b3   :  { %v1099_v52 = vpop.f32.mrb[10].mxu1 }
 0x1b4   :  { %v1100_v39 = vadd.f32 %v1612_v22, %v1099_v52  ;;  %v1101_v15 = vpop.f32.mrb[11].mxu1  ;;  %v1400_v52 = vshrl.u32 %v1399_v58, 7 }
 0x1b6   :  { %1129 = vst.msk [vmem:[#allocation4 + $0x8] sm:$0xff] %vm107_vm0, %v1100_v39  ;;  %v1401_v15 = vsub.s32 0, %v1400_v52 }
 0x1b7   :  { %v1104_v62 = vpop.f32.mrb[12].mxu1 }
 0x1b8   :  { %v1105_v23 = vadd.f32 %v1615_v3, %v1104_v62  ;;  %v1106_v14 = vpop.f32.mrb[13].mxu1 }
 0x1b9   :  { %v1391_v14 = vld [vmem:[%s2717_s3] sm:$0x1] }
 0x1ba   :  { %1130 = vst.msk [vmem:[#allocation4 + $0x10] sm:$0xff] %vm107_vm0, %v1105_v23 }
 0x1bb   :  { %v1109_v20 = vpop.f32.mrb[14].mxu1 }
 0x1bc   :  { %v1110_v1 = vadd.f32 %v1618_v12, %v1109_v20  ;;  %v1111_v36 = vpop.f32.mrb[15].mxu1 }
 0x1bd   :  { %v1257_v24 = vld [vmem:[#allocation4 + $0x8] sm:$0xff] }
 0x1be   :  { %1131 = vst.msk [vmem:[#allocation4 + $0x18] sm:$0xff] %vm107_vm0, %v1110_v1  ;;  %1759 = vmatmul.mubr.msk.f32.gmra.mrb[22].mxu1 %vm107_vm0, %v1257_v24 }
 0x1bf   :  { %v1114_v31 = vpop.f32.mrb[16].mxu1  ;;  %1761 = vmatprep.mubr.msk.f32.mxu1 %vm2027_vm4, %v2026_v28 }
 0x1c0   :  { %v1115_v29 = vadd.f32 %v1621_v18, %v1114_v31  ;;  %v1116_v27 = vpop.f32.mrb[17].mxu1 }
 0x1c1   :  { %v1258_v0 = vld [vmem:[#allocation4 + $0x10] sm:$0xff] }
 0x1c2   :  { %1133 = vst.msk [vmem:[#allocation4 + $0x20] sm:$0xf] %vm1132_vm5, %v1115_v29  ;;  %1762 = vmatmul.mubr.msk.f32.gmra.mrb[24].mxu1 %vm107_vm0, %v1258_v0 }
 0x1c3   :  { %1764 = vmatprep.mubr.msk.f32.mxu1 %vm2027_vm4, %v2026_v28  ;;  %v1251_v21 = vpop.f32.mrb[18].mxu1 }
 0x1c4   :  { %v1744_v61 = vpop.f32.mrb[19].mxu1  ;;  %v1255_v32 = vmul.f32 0.002232143, %v1251_v21 }
 0x1c5   :  { %v1259_v30 = vld [vmem:[#allocation4 + $0x18] sm:$0xff] }
 0x1c6   :  { %1765 = vmatmul.mubr.msk.f32.gmra.mrb[26].mxu1 %vm107_vm0, %v1259_v30  ;;  %v1383_v18 = vmul.f32 %v1255_v32, %v1255_v32 }
 0x1c7   :  { %1767 = vmatprep.mubr.msk.f32.mxu1 %vm2027_vm4, %v2026_v28 }
 0x1c9   :  { %v1260_v6 = vld [vmem:[#allocation4 + $0x20] sm:$0xf] }
 0x1ca   :  { %1768 = vmatmul.mubr.msk.f32.gmra.mrb[28].mxu1 %vm107_vm0, %v1260_v6 }
 0x279   :  { %v1342_v33 = vpop.f32.mrb[20].mxu1 }
 0x27a   :  { %v1757_v45 = vpop.f32.mrb[21].mxu1  ;;  %v1366_v41 = vmul.f32 %v1342_v33, %v2606_v40 }
 0x291   :  { %v1347_v37 = vpop.f32.mrb[22].mxu1 }
 0x292   :  { %v1367_v56 = vmul.f32 %v1347_v37, %v2608_v5  ;;  %v1760_v4 = vpop.f32.mrb[23].mxu1 }
 0x294   :  { %v1371_v17 = vadd.f32 %v1367_v56, %v1366_v41 }
 0x295   :  { %v1352_v26 = vpop.f32.mrb[24].mxu1 }
 0x296   :  { %v1368_v53 = vmul.f32 %v1352_v26, %v2610_v54  ;;  %v1763_v42 = vpop.f32.mrb[25].mxu1 }
 0x298   :  { %v1372_v60 = vadd.f32 %v1371_v17, %v1368_v53 }
 0x299   :  { %v1357_v28 = vpop.f32.mrb[26].mxu1 }
 0x29a   :  { %v1369_v25 = vmul.f32 %v1357_v28, %v2614_v2  ;;  %v1766_v35 = vpop.f32.mrb[27].mxu1 }
 0x29c   :  { %v1373_v47 = vadd.f32 %v1372_v60, %v1369_v25 }
 0x29d   :  { %v1362_v22 = vpop.f32.mrb[28].mxu1 }
 0x29e   :  { %v1370_v57 = vmul.f32 %v1362_v22, %v2620_v50  ;;  %v1769_v63 = vpop.f32.mrb[29].mxu1  ;;  %v1386_v50 = vld [vmem:[%s2716_s2] sm:$0x1]  ;;  %s2028_s2 = smov [#allocation10]  }
 0x29f   :  { %v1387_v39 = vand.u32 2147483647, %v1386_v50  ;;  %s1431_s3 = sshll.u32 %s2028_s2, 4  ;;  %s1432_s3 = int_to_ptr.vmem [resolvable:$true] %s1431_s3 }
 0x2a0   :  { %v1374_v40 = vsel %vm276_vm1, %v1370_v57, 0.0  ;;  %s1993_s17 = scalar_lea.vmem %s1432_s3, 512  ;;  %p1998_p3 = scmp.lt.s32.totalorder %s1432_s3, %s1432_s3 }
 0x2a1   :  { %v1375_v3 = vadd.f32 %v1374_v40, %v1373_v47  ;;  %p1994_p2 = scmp.ne.s32.totalorder %s1432_s3, %s1993_s17  ;;  %p1999_p4 = scmp.lt.s32.totalorder %s1993_s17, %s1993_s17 }
 0x2a3   :  { %v1376_v5 = vrot.slane %v1375_v3, 4  ;;  %p2000_p5 = por %p1999_p4, %p1998_p3 }
 0x2a5   :  { %v1377_v11 = vadd.f32 %v1376_v5, %v1375_v3  ;;  %p2001_p6 = pnand %p2000_p5, %p1994_p2 }
 0x2a7   :  { %v1378_v59 = vrot.slane %v1377_v11, 2 }
 0x2a9   :  { %v1379_v12 = vadd.f32 %v1378_v59, %v1377_v11 }
 0x2ab   :  { %v1380_v54 = vrot.slane %v1379_v12, 1 }
 0x2ad   :  { %v1381_v13 = vadd.f32 %v1380_v54, %v1379_v12 }
 0x2af   :  { %v1382_v34 = vmul.f32 0.002232143, %v1381_v13 }
 0x2b1   :  { %v1384_v51 = vsub.f32 %v1382_v34, %v1383_v18 }
 0x2b3   :  { %v1385_v2 = vmax.f32 %v1384_v51, 0.0 }
 0x2b5   :  { %v1388_v46 = vadd.f32 1e-05, %v1385_v2 }
 0x2b7   :  { %1947 = vrsqrt.f32 %v1388_v46 }
 0x2c1   :  { %v1948_v62 = vpop.eup %1947 }
 0x2c2   :  { %v1390_v23 = vmul.f32 %v1948_v62, %v1387_v39 }
 0x2c4   :  { %v1392_v20 = vmul.f32 %v1390_v23, %v1255_v32  ;;  %v1402_v1 = vrot.slane %v1390_v23, %v1401_v15 }
 0x2c6   :  { %v1393_v36 = vsub.f32 %v1391_v14, %v1392_v20  ;;  %v1404_v24 = vmul.f32 %v1402_v1, %v637_v38  ;;  %v1405_v31 = vmul.f32 %v1402_v1, %v650_v49  ;;  %v1406_v29 = vmul.f32 %v1402_v1, %v663_v19 }
 0x2c7   :  { %v1407_v27 = vmul.f32 %v1402_v1, %v676_v55 }
 0x2c8   :  { %v1412_v0 = vrot.slane %v1393_v36, %v1401_v15 }
 0x2ca   :  { %v1414_v30 = vadd.f32 %v1412_v0, %v1404_v24  ;;  %v1415_v6 = vadd.f32 %v1412_v0, %v1405_v31  ;;  %v1416_v21 = vadd.f32 %v1412_v0, %v1406_v29  ;;  %v1417_v48 = vadd.f32 %v1412_v0, %v1407_v27 }
 0x2cc   :  { %v1418_v43 = vmax.f32 %v1414_v30, 0.0  ;;  %v1419_v38 = vmax.f32 %v1415_v6, 0.0  ;;  %v1420_v61 = vmax.f32 %v1416_v21, 0.0  ;;  %v1421_v8 = vmax.f32 %v1417_v48, 0.0 }
 0x2ce   :  { %1422 = vst [vmem:[#allocation10] sm:$0xff] %v1418_v43  ;;  %1423 = vst [vmem:[#allocation10 + $0x8] sm:$0xff] %v1419_v38 }
 0x2cf   :  { %1424 = vst [vmem:[#allocation10 + $0x10] sm:$0xff] %v1420_v61  ;;  %1425 = vst [vmem:[#allocation10 + $0x18] sm:$0xff] %v1421_v8 }
 0x2d0   :  { %2004 = shalt.err (!%p2001_p6)
}
 0x2d1   :  { %s2005_s20 = scalar_lea.hbm %s2718_s4, 512 }
 0x2d2   :  { %p2006_p7 = scmp.ne.s32.totalorder %s2718_s4, %s2005_s20  ;;  %p2009_p8 = scmp.lt.u32.totalorder %s2005_s20, %s2718_s4 }
 0x2d4   :  { %p2011_p9 = pnand %p2009_p8, %p2006_p7 }
 0x2d6   :  { %2014 = shalt.err (!%p2011_p9)
}
 0x2d7   :  { %1437 = dma.vmem_to_hbm [thread:$0]  %s1432_s3, 512, %s2718_s4, [#allocation7], %s2022_s25, %s2022_s25, %s2023_s26  }
 0x2d8   :  { %2019 = dma.done.wait [#allocation7], 512  }
 0x2d9   :  { %2020 = vsyncadd [#allocation7], 4294966784 }
 0x2da   :  { %1441 = vsyncpa [#allocation6], 1 }
 0x2db   :  { %1442 = vsyncpa [#allocation9], 1 }
 0x2dc   :  { %1443 = vsyncpa [#allocation7], 1 }

</bundles_post_ra>
